<compile_context>
chip_gen: v7x
topology: tpu7x:2x2x1
jax: 0.10.0
libtpu: 0.0.40
codegen_flags: <defaults>
</compile_context>

<pallas_src>
import jax
import jax.numpy as jnp
from jax import lax
from jax.experimental import pallas as pl
from jax.experimental.pallas import tpu as pltpu


# ------------------------------ Pallas kernels ------------------------------

def _down_kernel(w_ref, p_ref, o_ref):
    """LeakyReLU(0.2) -> 4x4/s2 conv (as GEMM) -> ReLU, one pixel-tile at a time.

    w_ref: (inner_nc, C_in*16)   pre-arranged in the wrapper (no in-kernel .T)
    p_ref: (C_in*16, TM)         im2col'd input, lanes = flattened output pixels
    o_ref: (inner_nc, TM)
    """
    p = p_ref[...]
    # downrelu (LeakyReLU 0.2); leaky(0) == 0 so padding taps stay zero.
    p = jnp.where(p >= 0.0, p, 0.2 * p)
    acc = jnp.dot(w_ref[...], p, preferred_element_type=jnp.float32)
    o_ref[...] = jnp.maximum(acc, 0.0)          # uprelu fused as epilogue


def _up_kernel(w_ref, b_ref, p_ref, o_ref):
    """4x4/s2 transposed conv (as GEMM over the zero-dilated input) with BatchNorm
    folded into the weight / bias.

    w_ref: (outer_nc, inner_nc*16)  already scaled by gamma / sqrt(var + eps)
    b_ref: (outer_nc, 1)            beta - scale * running_mean
    p_ref: (inner_nc*16, TM)
    o_ref: (outer_nc, TM)
    """
    acc = jnp.dot(w_ref[...], p_ref[...], preferred_element_type=jnp.float32)
    o_ref[...] = acc + b_ref[...]


# ------------------------------ pallas_call glue -----------------------------

def _pick_tile(m):
    """Largest lane-dense tile (multiple of 128) dividing m, else full extent."""
    for t in (2048, 1024, 512, 256, 128):
        if t <= m and m % t == 0:
            return t
    return m


_COMPILER_PARAMS = pltpu.CompilerParams(
    dimension_semantics=("parallel",),            # megacore-friendly on v7x
    vmem_limit_bytes=32 * 1024 * 1024,            # stays within v7x scoped VMEM
)


def _call_down(w, p_t):
    cout, kdim = w.shape
    _, m = p_t.shape
    tm = _pick_tile(m)
    return pl.pallas_call(
        _down_kernel,
        out_shape=jax.ShapeDtypeStruct((cout, m), jnp.float32),
        grid=(m // tm,),
        in_specs=[
            pl.BlockSpec((cout, kdim), lambda i: (0, 0)),   # small weight, VMEM resident
            pl.BlockSpec((kdim, tm), lambda i: (0, i)),     # pixel tiles, pipelined
        ],
        out_specs=pl.BlockSpec((cout, tm), lambda i: (0, i)),
        compiler_params=_COMPILER_PARAMS,
    )(w, p_t)


def _call_up(w, b, p_t):
    cout, kdim = w.shape
    _, m = p_t.shape
    tm = _pick_tile(m)
    return pl.pallas_call(
        _up_kernel,
        out_shape=jax.ShapeDtypeStruct((cout, m), jnp.float32),
        grid=(m // tm,),
        in_specs=[
            pl.BlockSpec((cout, kdim), lambda i: (0, 0)),
            pl.BlockSpec((cout, 1), lambda i: (0, 0)),
            pl.BlockSpec((kdim, tm), lambda i: (0, i)),
        ],
        out_specs=pl.BlockSpec((cout, tm), lambda i: (0, i)),
        compiler_params=_COMPILER_PARAMS,
    )(w, b, p_t)


# ------------------------------ host-side plumbing ---------------------------

def _im2col(x, k, stride, pad):
    """(N, C, H, W) -> ((C*k*k, N*Ho*Wo), Ho, Wo).

    Tap ordering is c*k*k + kh*k + kw, matching PyTorch weight.reshape(out, -1).
    """
    n, c, h, w = x.shape
    if pad:
        x = jnp.pad(x, ((0, 0), (0, 0), (pad, pad), (pad, pad)))
    hp, wp = h + 2 * pad, w + 2 * pad
    ho = (hp - k) // stride + 1
    wo = (wp - k) // stride + 1
    taps = []
    for kh in range(k):
        for kw in range(k):
            taps.append(lax.slice(
                x, (0, 0, kh, kw),
                (n, c, kh + stride * (ho - 1) + 1, kw + stride * (wo - 1) + 1),
                (1, 1, stride, stride)))                       # (N, C, Ho, Wo)
    pat = jnp.stack(taps, axis=2).reshape(n, c * k * k, ho, wo)
    return pat.transpose(1, 0, 2, 3).reshape(c * k * k, n * ho * wo), ho, wo


def unet_skip_innermost(x, w_down, w_up, bn_gamma, bn_beta, bn_mean, bn_var,
                        eps=1e-5):
    """Innermost UnetSkipConnectionBlock: returns concat([x, model(x)], axis=1).

    x       : (N, C, H, W)
    w_down  : (inner_nc, C, 4, 4)        Conv2d weight      (bias=False; BN follows)
    w_up    : (inner_nc, outer_nc, 4, 4) ConvTranspose2d weight (PyTorch in/out order)
    bn_*    : (outer_nc,)                eval-mode BatchNorm2d params / running stats
    """
    x = x.astype(jnp.float32)
    n, c_in, h, w = x.shape
    inner_nc = w_down.shape[0]
    outer_nc = w_up.shape[1]
    k, s, p = 4, 2, 1

    # ---- down path: LeakyReLU -> Conv2d(4,4, s=2, p=1) -> ReLU  (kernel 1) ----
    p1, ho, wo = _im2col(x, k=k, stride=s, pad=p)              # (C*16, N*Ho*Wo)
    w1 = w_down.reshape(inner_nc, c_in * k * k).astype(jnp.float32)
    d = _call_down(w1, p1)                                     # (inner_nc, N*Ho*Wo)

    # ---- up path: ConvTranspose2d(4,4, s=2, p=1) -> BatchNorm  (kernel 2) ----
    # Transposed conv == stride-1 conv of the zero-dilated input (pad k-1-p) with
    # the spatially-flipped, in/out-swapped kernel.
    d_img = d.reshape(inner_nc, n, ho, wo).transpose(1, 0, 2, 3)
    d_dil = jnp.zeros((n, inner_nc, 2 * ho - 1, 2 * wo - 1), jnp.float32)
    d_dil = d_dil.at[:, :, ::2, ::2].set(d_img)
    p2, h_out, w_out = _im2col(d_dil, k=k, stride=1, pad=k - 1 - p)   # (inner*16, N*H*W)

    w_conv = jnp.flip(w_up, axis=(2, 3)).transpose(1, 0, 2, 3).reshape(
        outer_nc, inner_nc * k * k).astype(jnp.float32)
    scale = bn_gamma / jnp.sqrt(bn_var + eps)                  # fold eval-mode BN
    w2 = w_conv * scale[:, None]
    b2 = (bn_beta - scale * bn_mean).reshape(outer_nc, 1).astype(jnp.float32)

    y = _call_up(w2, b2, p2)                                   # (outer_nc, N*H*W)
    y = y.reshape(outer_nc, n, h_out, w_out).transpose(1, 0, 2, 3)

    # U-Net skip connection (channel concat is layout plumbing; left to XLA).
    return jnp.concatenate([x, y], axis=1)


# ------------------------------ pure-JAX reference ---------------------------

def unet_skip_innermost_ref(x, w_down, w_up, bn_gamma, bn_beta, bn_mean, bn_var,
                            eps=1e-5):
    dn = ('NCHW', 'OIHW', 'NCHW')
    hpre = jnp.where(x >= 0.0, x, 0.2 * x)
    d = lax.conv_general_dilated(hpre, w_down, window_strides=(2, 2),
                                 padding=((1, 1), (1, 1)), dimension_numbers=dn)
    d = jnp.maximum(d, 0.0)
    w_conv = jnp.flip(w_up, axis=(2, 3)).transpose(1, 0, 2, 3)
    u = lax.conv_general_dilated(d, w_conv, window_strides=(1, 1),
                                 padding=((2, 2), (2, 2)), lhs_dilation=(2, 2),
                                 dimension_numbers=dn)
    y = (bn_gamma[None, :, None, None] * (u - bn_mean[None, :, None, None])
         / jnp.sqrt(bn_var[None, :, None, None] + eps)
         + bn_beta[None, :, None, None])
    return jnp.concatenate([x, y], axis=1)


# ----------------------------------- main ------------------------------------

if __name__ == "__main__":
    # Innermost block config: outer_nc = input_nc = 4, inner_nc = 8, spatial 16x16.
    n, outer_nc, inner_nc, h, w = 2, 4, 8, 16, 16
    input_nc = outer_nc

    key = jax.random.PRNGKey(0)
    ks = jax.random.split(key, 7)
    x = jax.random.normal(ks[0], (n, input_nc, h, w), dtype=jnp.float32)
    # Conv2d(input_nc, inner_nc, 4, stride=2, padding=1, bias=False)  (BN -> no bias)
    w_down = 0.1 * jax.random.normal(ks[1], (inner_nc, input_nc, 4, 4), jnp.float32)
    # ConvTranspose2d(inner_nc, outer_nc, 4, stride=2, padding=1, bias=False)
    w_up = 0.1 * jax.random.normal(ks[2], (inner_nc, outer_nc, 4, 4), jnp.float32)
    # BatchNorm2d(outer_nc) — eval-mode parameters / running statistics.
    bn_gamma = 1.0 + 0.1 * jax.random.normal(ks[3], (outer_nc,), jnp.float32)
    bn_beta = 0.1 * jax.random.normal(ks[4], (outer_nc,), jnp.float32)
    bn_mean = 0.1 * jax.random.normal(ks[5], (outer_nc,), jnp.float32)
    bn_var = jax.random.uniform(ks[6], (outer_nc,), jnp.float32, 0.5, 1.5)

    fwd = jax.jit(unet_skip_innermost)
    out = fwd(x, w_down, w_up, bn_gamma, bn_beta, bn_mean, bn_var)
    jax.block_until_ready(out)

    ref = unet_skip_innermost_ref(x, w_down, w_up, bn_gamma, bn_beta, bn_mean, bn_var)
    assert out.shape == (n, input_nc + outer_nc, h, w)
    err = float(jnp.max(jnp.abs(out - ref)))
    assert jnp.allclose(out, ref, atol=2e-4, rtol=2e-4), f"max abs err = {err}"

    print("KERNEL_OK")
</pallas_src>

<mosaic_0001>
module attributes {stable_mosaic.version = 11 : i64} {
  func.func @_down_kernel(%arg0: i32, %arg1: memref<8x64xf32, #tpu.memory_space<vmem>>, %arg2: memref<64x128xf32, #tpu.memory_space<vmem>>, %arg3: memref<8x128xf32, #tpu.memory_space<vmem>>) attributes {dimension_semantics = [#tpu.dimension_semantics<parallel>], iteration_bounds = array<i64: 1>, scalar_prefetch = 0 : i64, scratch_operands = 0 : i64, tpu.core_type = #tpu.core_type<tc>, window_params = [{pipeline_mode = #tpu.pipeline_mode<synchronous>, transform_indices = @transform_0, window_bounds = array<i64: 8, 64>}, {transform_indices = @transform_1, window_bounds = array<i64: 64, 128>}, {transform_indices = @transform_2, window_bounds = array<i64: 8, 128>}]} {
    %c0 = arith.constant 0 : index
    %c0_0 = arith.constant 0 : index
    %0 = vector.load %arg2[%c0, %c0_0] : memref<64x128xf32, #tpu.memory_space<vmem>>, vector<64x128xf32>
    %cst = arith.constant 0.000000e+00 : f32
    %1 = vector.broadcast %cst : f32 to vector<64x128xf32>
    %2 = arith.cmpf oge, %0, %1 : vector<64x128xf32>
    %cst_1 = arith.constant 2.000000e-01 : f32
    %3 = vector.broadcast %cst_1 : f32 to vector<64x128xf32>
    %4 = arith.mulf %3, %0 : vector<64x128xf32>
    %5 = arith.select %2, %0, %4 : vector<64x128xi1>, vector<64x128xf32>
    %c0_2 = arith.constant 0 : index
    %c0_3 = arith.constant 0 : index
    %6 = vector.load %arg1[%c0_2, %c0_3] : memref<8x64xf32, #tpu.memory_space<vmem>>, vector<8x64xf32>
    %cst_4 = arith.constant dense<0.000000e+00> : vector<8x128xf32>
    %7 = tpu.matmul %6, %5, %cst_4 {dimension_numbers = #tpu.dot_dimension_numbers<[1], [0], [0], [1], [0, 0, 1, 1], [], []>} : vector<8x64xf32>, vector<64x128xf32>, vector<8x128xf32> -> vector<8x128xf32>
    %cst_5 = arith.constant 0.000000e+00 : f32
    %8 = vector.broadcast %cst_5 : f32 to vector<8x128xf32>
    %9 = arith.maximumf %7, %8 : vector<8x128xf32>
    %c0_6 = arith.constant 0 : index
    %c0_7 = arith.constant 0 : index
    %10 = vector.load %arg3[%c0_6, %c0_7] : memref<8x128xf32, #tpu.memory_space<vmem>>, vector<8x128xf32>
    tpu.vector_store %arg3[%c0_6, %c0_7], %9 {strides = array<i32>} : memref<8x128xf32, #tpu.memory_space<vmem>>, vector<8x128xf32>,
    return
  }
  func.func @transform_0(%arg0: i32) -> (i32, i32) {
    %c0_i32 = arith.constant 0 : i32
    %c0_i32_0 = arith.constant 0 : i32
    %c0_i32_1 = arith.constant 0 : i32
    return %c0_i32, %c0_i32_0 : i32, i32
  }
  func.func @transform_1(%arg0: i32) -> (i32, i32) {
    %c0_i32 = arith.constant 0 : i32
    %c0_i32_0 = arith.constant 0 : i32
    return %c0_i32, %arg0 : i32, i32
  }
  func.func @transform_2(%arg0: i32) -> (i32, i32) {
    %c0_i32 = arith.constant 0 : i32
    %c0_i32_0 = arith.constant 0 : i32
    return %c0_i32, %arg0 : i32, i32
  }
}

module attributes {stable_mosaic.version = 11 : i64} {
  func.func @_up_kernel(%arg0: i32, %arg1: memref<4x128xf32, #tpu.memory_space<vmem>>, %arg2: memref<4x1xf32, #tpu.memory_space<vmem>>, %arg3: memref<128x512xf32, #tpu.memory_space<vmem>>, %arg4: memref<4x512xf32, #tpu.memory_space<vmem>>) attributes {dimension_semantics = [#tpu.dimension_semantics<parallel>], iteration_bounds = array<i64: 1>, scalar_prefetch = 0 : i64, scratch_operands = 0 : i64, tpu.core_type = #tpu.core_type<tc>, window_params = [{pipeline_mode = #tpu.pipeline_mode<synchronous>, transform_indices = @transform_0, window_bounds = array<i64: 4, 128>}, {pipeline_mode = #tpu.pipeline_mode<synchronous>, transform_indices = @transform_1, window_bounds = array<i64: 4, 1>}, {transform_indices = @transform_2, window_bounds = array<i64: 128, 512>}, {transform_indices = @transform_3, window_bounds = array<i64: 4, 512>}]} {
    %c0 = arith.constant 0 : index
    %c0_0 = arith.constant 0 : index
    %0 = vector.load %arg1[%c0, %c0_0] : memref<4x128xf32, #tpu.memory_space<vmem>>, vector<4x128xf32>
    %c0_1 = arith.constant 0 : index
    %c0_2 = arith.constant 0 : index
    %1 = vector.load %arg3[%c0_1, %c0_2] : memref<128x512xf32, #tpu.memory_space<vmem>>, vector<128x512xf32>
    %cst = arith.constant dense<0.000000e+00> : vector<4x512xf32>
    %2 = tpu.matmul %0, %1, %cst {dimension_numbers = #tpu.dot_dimension_numbers<[1], [0], [0], [1], [0, 0, 1, 1], [], []>} : vector<4x128xf32>, vector<128x512xf32>, vector<4x512xf32> -> vector<4x512xf32>
    %c0_3 = arith.constant 0 : index
    %c0_4 = arith.constant 0 : index
    %3 = vector.load %arg2[%c0_3, %c0_4] : memref<4x1xf32, #tpu.memory_space<vmem>>, vector<4x1xf32>
    %4 = vector.broadcast %3 : vector<4x1xf32> to vector<4x512xf32>
    %5 = arith.addf %2, %4 : vector<4x512xf32>
    %c0_5 = arith.constant 0 : index
    %c0_6 = arith.constant 0 : index
    %6 = vector.load %arg4[%c0_5, %c0_6] : memref<4x512xf32, #tpu.memory_space<vmem>>, vector<4x512xf32>
    tpu.vector_store %arg4[%c0_5, %c0_6], %5 {strides = array<i32>} : memref<4x512xf32, #tpu.memory_space<vmem>>, vector<4x512xf32>,
    return
  }
  func.func @transform_0(%arg0: i32) -> (i32, i32) {
    %c0_i32 = arith.constant 0 : i32
    %c0_i32_0 = arith.constant 0 : i32
    %c0_i32_1 = arith.constant 0 : i32
    return %c0_i32, %c0_i32_0 : i32, i32
  }
  func.func @transform_1(%arg0: i32) -> (i32, i32) {
    %c0_i32 = arith.constant 0 : i32
    %c0_i32_0 = arith.constant 0 : i32
    %c0_i32_1 = arith.constant 0 : i32
    return %c0_i32, %c0_i32_0 : i32, i32
  }
  func.func @transform_2(%arg0: i32) -> (i32, i32) {
    %c0_i32 = arith.constant 0 : i32
    %c0_i32_0 = arith.constant 0 : i32
    return %c0_i32, %arg0 : i32, i32
  }
  func.func @transform_3(%arg0: i32) -> (i32, i32) {
    %c0_i32 = arith.constant 0 : i32
    %c0_i32_0 = arith.constant 0 : i32
    return %c0_i32, %arg0 : i32, i32
  }
}

</mosaic_0001>

<bundles_post_ra>
// kernel: unet_skip_innermost.2
= control target key start
LH: loop header
LB: loop body
LE: loop exit
PB: predicated region body
PF: predicated region fallthrough
CT: control target
= control target key end

     0   :  { %v168_v0 = vmov 0.0|0.0   ;;  %vm169_vm0 = vmmov 0   ;;  %v170_v4 = vmov 0.0   ;;  %vm44_vm9 = vcmask 523264   ;;  %s216_s1 = inlined_call_operand.vmem [shape: f32[64,128], index: 1, kind: input, shape index: {}]   ;;  %s217_s0 = inlined_call_operand.vmem [shape: f32[8,64], index: 0, kind: input, shape index: {}]   ;;  %s218_s2 = inlined_call_operand.vmem [shape: f32[8,128], index: 2, kind: output, shape index: {}]  }
   0x1   :  { %153 = vmatprep.subr.bf16.mxu0 %v168_v0  ;;  %v11_v1 = vld [vmem:[%s216_s1] sm:$0xff]  ;;  %v12_v2 = vld [vmem:[%s216_s1 + $0x8] sm:$0xff]  ;;  %v13_v3 = vld [vmem:[%s216_s1 + $0x10] sm:$0xff]  ;;  %150 = vmatprep.mubr.msk.f32.mxu0 %vm169_vm0, %v170_v4 }
   0x2   :  { %vm19_vm1 = vcmp.ge.f32.partialorder %v11_v1, 0.0  ;;  %vm20_vm2 = vcmp.ge.f32.partialorder %v12_v2, 0.0  ;;  %v27_v5 = vmul.f32 0.2, %v11_v1  ;;  %v28_v6 = vmul.f32 0.2, %v12_v2 }
   0x3   :  { %v14_v7 = vld [vmem:[%s216_s1 + $0x18] sm:$0xff]  ;;  %vm21_vm3 = vcmp.ge.f32.partialorder %v13_v3, 0.0  ;;  %v29_v8 = vmul.f32 0.2, %v13_v3  ;;  %v15_v9 = vld [vmem:[%s216_s1 + $0x20] sm:$0xff]  ;;  %v16_v10 = vld [vmem:[%s216_s1 + $0x28] sm:$0xff] }
   0x4   :  { %v35_v11 = vsel %vm19_vm1, %v11_v1, %v27_v5  ;;  %v36_v12 = vsel %vm20_vm2, %v12_v2, %v28_v6  ;;  %vm22_vm4 = vcmp.ge.f32.partialorder %v14_v7, 0.0  ;;  %v30_v13 = vmul.f32 0.2, %v14_v7  ;;  %v17_v16 = vld [vmem:[%s216_s1 + $0x30] sm:$0xff]  ;;  %v18_v17 = vld [vmem:[%s216_s1 + $0x38] sm:$0xff]  ;;  %v43_v30 = vld [vmem:[%s217_s0] sm:$0xff] }
   0x5   :  { %v154_v14 = vpack.c.bf16 %v36_v12, %v35_v11  ;;  %v37_v15 = vsel %vm21_vm3, %v13_v3, %v29_v8  ;;  %vm23_vm5 = vcmp.ge.f32.partialorder %v15_v9, 0.0  ;;  %vm24_vm6 = vcmp.ge.f32.partialorder %v16_v10, 0.0 }
   0x6   :  { %v38_v18 = vsel %vm22_vm4, %v14_v7, %v30_v13  ;;  %v31_v19 = vmul.f32 0.2, %v15_v9  ;;  %v32_v20 = vmul.f32 0.2, %v16_v10  ;;  %v33_v24 = vmul.f32 0.2, %v17_v16 }
   0x7   :  { %155 = vmatpush3.bf16.msra.mxu0 %v154_v14  ;;  %v157_v21 = vpack.c.bf16 %v38_v18, %v37_v15  ;;  %v34_v25 = vmul.f32 0.2, %v18_v17  ;;  %vm25_vm7 = vcmp.ge.f32.partialorder %v17_v16, 0.0  ;;  %vm26_vm8 = vcmp.ge.f32.partialorder %v18_v17, 0.0 }
   0x8   :  { %156 = vmatprep.subr.bf16.mxu0 %v168_v0  ;;  %v39_v22 = vsel %vm23_vm5, %v15_v9, %v31_v19  ;;  %v40_v23 = vsel %vm24_vm6, %v16_v10, %v32_v20  ;;  %v41_v27 = vsel %vm25_vm7, %v17_v16, %v33_v24 }
   0x9   :  { %v160_v26 = vpack.c.bf16 %v40_v23, %v39_v22  ;;  %v42_v28 = vsel %vm26_vm8, %v18_v17, %v34_v25 }
   0xa   :  { %v163_v29 = vpack.c.bf16 %v42_v28, %v41_v27 }
   0xb   :  { %158 = vmatpush3.bf16.msra.mxu0 %v157_v21 }
   0xc   :  { %159 = vmatprep.subr.bf16.mxu0 %v168_v0 }
   0xf   :  { %161 = vmatpush3.bf16.msra.mxu0 %v160_v26 }
  0x10   :  { %162 = vmatprep.subr.bf16.mxu0 %v168_v0 }
  0x13   :  { %164 = vmatpush3.bf16.msra.mxu0 %v163_v29 }
  0x16   :  { %151 = vmatmul.mubr.msk.f32.vlgmr.msra.gmra.mrb[0].mxu0 %vm44_vm9, %v43_v30 }
  0xe9   :  { %v114_v31 = vpop.f32.mrb[0].mxu0 }
  0xea   :  { %v118_v32 = vmax.f32 %v114_v31, 0.0  ;;  %v152_v33 = vpop.f32.mrb[1].mxu0 }
  0xec   :  { %119 = vst [vmem:[%s218_s2] sm:$0xff] %v118_v32 }

// kernel: unet_skip_innermost.3
= control target key start
LH: loop header
LB: loop body
LE: loop exit
PB: predicated region body
PF: predicated region fallthrough
CT: control target
= control target key end

     0   :  { %v308_v3 = vmov 0.0   ;;  %v309_v8 = vmov 0   ;;  %s534_s2 = inlined_call_operand.vmem [shape: f32[128,512], index: 2, kind: input, shape index: {}]   ;;  %s535_s1 = inlined_call_operand.vmem [shape: f32[4,1], index: 1, kind: input, shape index: {}]   ;;  %s536_s0 = inlined_call_operand.vmem [shape: f32[4,128], index: 0, kind: input, shape index: {}]   ;;  %s537_s3 = inlined_call_operand.vmem [shape: f32[4,512], index: 3, kind: output, shape index: {}]  }
   0x1   :  { %v16_v0 = vld [vmem:[%s534_s2 + $0x8] sm:$0xff]  ;;  %v18_v2 = vld [vmem:[%s534_s2 + $0x18] sm:$0xff]  ;;  %149 = vmatprep.mubr.f32.mxu0 %v308_v3  ;;  %220 = vmatprep.mubr.f32.mxu1 %v308_v3  ;;  %v15_v6 = vld [vmem:[%s534_s2] sm:$0xff] }
   0x2   :  { %v20_v1 = vld [vmem:[%s534_s2 + $0x28] sm:$0xff]  ;;  %v22_v5 = vld [vmem:[%s534_s2 + $0x38] sm:$0xff]  ;;  %v19_v7 = vld [vmem:[%s534_s2 + $0x20] sm:$0xff]  ;;  %307 = vset.pattern.permute.xlu0 %v309_v8 }
   0x3   :  { %v241_v4 = vpack.c.bf16 %v20_v1, %v16_v0  ;;  %v273_v9 = vpack.c.bf16 %v22_v5, %v18_v2  ;;  %v243_v10 = vpack.c.bf16 %v19_v7, %v15_v6  ;;  %v17_v11 = vld [vmem:[%s534_s2 + $0x10] sm:$0xff]  ;;  %v24_v13 = vld [vmem:[%s534_s2 + $0x48] sm:$0xff]  ;;  %v26_v16 = vld [vmem:[%s534_s2 + $0x58] sm:$0xff] }
   0x4   :  { %v21_v12 = vld [vmem:[%s534_s2 + $0x30] sm:$0xff]  ;;  %v28_v15 = vld [vmem:[%s534_s2 + $0x68] sm:$0xff]  ;;  %v30_v17 = vld [vmem:[%s534_s2 + $0x78] sm:$0xff] }
   0x5   :  { %242 = vmatprep.subr.bf16.mxu0 %v241_v4  ;;  %v275_v14 = vpack.c.bf16 %v21_v12, %v17_v11  ;;  %274 = vmatprep.subr.bf16.mxu1 %v273_v9  ;;  %v245_v18 = vpack.c.bf16 %v28_v15, %v24_v13  ;;  %v277_v19 = vpack.c.bf16 %v30_v17, %v26_v16  ;;  %v23_v20 = vld [vmem:[%s534_s2 + $0x40] sm:$0xff]  ;;  %v25_v22 = vld [vmem:[%s534_s2 + $0x50] sm:$0xff]  ;;  %v32_v25 = vld [vmem:[%s534_s2 + $0x88] sm:$0xff] }
   0x6   :  { %244 = vmatpush1.bf16.msra.mxu0 %v243_v10  ;;  %v27_v21 = vld [vmem:[%s534_s2 + $0x60] sm:$0xff]  ;;  %v29_v24 = vld [vmem:[%s534_s2 + $0x70] sm:$0xff]  ;;  %v36_v26 = vld [vmem:[%s534_s2 + $0xa8] sm:$0xff] }
   0x7   :  { %276 = vmatpush1.bf16.msra.mxu1 %v275_v14  ;;  %v247_v23 = vpack.c.bf16 %v27_v21, %v23_v20  ;;  %246 = vmatprep.subr.bf16.mxu0 %v245_v18  ;;  %v279_v27 = vpack.c.bf16 %v29_v24, %v25_v22  ;;  %v249_v28 = vpack.c.bf16 %v36_v26, %v32_v25  ;;  %v34_v29 = vld [vmem:[%s534_s2 + $0x98] sm:$0xff]  ;;  %v31_v31 = vld [vmem:[%s534_s2 + $0x80] sm:$0xff]  ;;  %v33_v34 = vld [vmem:[%s534_s2 + $0x90] sm:$0xff] }
   0x8   :  { %278 = vmatprep.subr.bf16.mxu1 %v277_v19  ;;  %v38_v30 = vld [vmem:[%s534_s2 + $0xb8] sm:$0xff]  ;;  %v35_v33 = vld [vmem:[%s534_s2 + $0xa0] sm:$0xff]  ;;  %v37_v35 = vld [vmem:[%s534_s2 + $0xb0] sm:$0xff] }
   0x9   :  { %v281_v32 = vpack.c.bf16 %v38_v30, %v34_v29  ;;  %v251_v36 = vpack.c.bf16 %v35_v33, %v31_v31  ;;  %v40_v37 = vld [vmem:[%s534_s2 + $0xc8] sm:$0xff]  ;;  %v42_v39 = vld [vmem:[%s534_s2 + $0xd8] sm:$0xff]  ;;  %v283_v40 = vpack.c.bf16 %v37_v35, %v33_v34  ;;  %v39_v43 = vld [vmem:[%s534_s2 + $0xc0] sm:$0xff] }
   0xa   :  { %248 = vmatpush1.bf16.msra.mxu0 %v247_v23  ;;  %v44_v38 = vld [vmem:[%s534_s2 + $0xe8] sm:$0xff]  ;;  %v46_v42 = vld [vmem:[%s534_s2 + $0xf8] sm:$0xff]  ;;  %v43_v44 = vld [vmem:[%s534_s2 + $0xe0] sm:$0xff] }
   0xb   :  { %280 = vmatpush1.bf16.msra.mxu1 %v279_v27  ;;  %250 = vmatprep.subr.bf16.mxu0 %v249_v28  ;;  %v253_v41 = vpack.c.bf16 %v44_v38, %v40_v37  ;;  %v285_v45 = vpack.c.bf16 %v46_v42, %v42_v39  ;;  %v41_v46 = vld [vmem:[%s534_s2 + $0xd0] sm:$0xff]  ;;  %v48_v48 = vld [vmem:[%s534_s2 + $0x108] sm:$0xff]  ;;  %v50_v50 = vld [vmem:[%s534_s2 + $0x118] sm:$0xff]  ;;  %v255_v52 = vpack.c.bf16 %v43_v44, %v39_v43 }
   0xc   :  { %282 = vmatprep.subr.bf16.mxu1 %v281_v32  ;;  %v45_v47 = vld [vmem:[%s534_s2 + $0xf0] sm:$0xff]  ;;  %v52_v49 = vld [vmem:[%s534_s2 + $0x128] sm:$0xff]  ;;  %v54_v51 = vld [vmem:[%s534_s2 + $0x138] sm:$0xff] }
   0xd   :  { %v287_v53 = vpack.c.bf16 %v45_v47, %v41_v46  ;;  %v257_v54 = vpack.c.bf16 %v52_v49, %v48_v48  ;;  %v47_v55 = vld [vmem:[%s534_s2 + $0x100] sm:$0xff]  ;;  %v49_v57 = vld [vmem:[%s534_s2 + $0x110] sm:$0xff]  ;;  %v289_v58 = vpack.c.bf16 %v54_v51, %v50_v50  ;;  %v56_v60 = vld [vmem:[%s534_s2 + $0x148] sm:$0xff] }
   0xe   :  { %252 = vmatpush1.bf16.msra.mxu0 %v251_v36  ;;  %v51_v56 = vld [vmem:[%s534_s2 + $0x120] sm:$0xff]  ;;  %v53_v59 = vld [vmem:[%s534_s2 + $0x130] sm:$0xff]  ;;  %v60_v61 = vld [vmem:[%s534_s2 + $0x168] sm:$0xff] }
   0xf   :  { %284 = vmatpush1.bf16.msra.mxu1 %v283_v40  ;;  %254 = vmatprep.subr.bf16.mxu0 %v253_v41  ;;  %v58_v62 = vld [vmem:[%s534_s2 + $0x158] sm:$0xff]  ;;  %v259_v0 = vpack.c.bf16 %v51_v56, %v47_v55  ;;  %v291_v1 = vpack.c.bf16 %v53_v59, %v49_v57  ;;  %v261_v2 = vpack.c.bf16 %v60_v61, %v56_v60  ;;  %v55_v3 = vld [vmem:[%s534_s2 + $0x140] sm:$0xff]  ;;  %v57_v5 = vld [vmem:[%s534_s2 + $0x150] sm:$0xff] }
  0x10   :  { %286 = vmatprep.subr.bf16.mxu1 %v285_v45  ;;  %v62_v63 = vld [vmem:[%s534_s2 + $0x178] sm:$0xff]  ;;  %v59_v4 = vld [vmem:[%s534_s2 + $0x160] sm:$0xff]  ;;  %v61_v7 = vld [vmem:[%s534_s2 + $0x170] sm:$0xff] }
  0x11   :  { %v293_v6 = vpack.c.bf16 %v62_v63, %v58_v62  ;;  %v64_v8 = vld [vmem:[%s534_s2 + $0x188] sm:$0xff]  ;;  %v66_v10 = vld [vmem:[%s534_s2 + $0x198] sm:$0xff]  ;;  %v263_v12 = vpack.c.bf16 %v59_v4, %v55_v3  ;;  %v63_v13 = vld [vmem:[%s534_s2 + $0x180] sm:$0xff]  ;;  %v295_v14 = vpack.c.bf16 %v61_v7, %v57_v5 }
  0x12   :  { %256 = vmatpush1.bf16.msra.mxu0 %v255_v52  ;;  %v68_v9 = vld [vmem:[%s534_s2 + $0x1a8] sm:$0xff]  ;;  %v70_v11 = vld [vmem:[%s534_s2 + $0x1b8] sm:$0xff]  ;;  %v67_v16 = vld [vmem:[%s534_s2 + $0x1a0] sm:$0xff] }
  0x13   :  { %288 = vmatpush1.bf16.msra.mxu1 %v287_v53  ;;  %258 = vmatprep.subr.bf16.mxu0 %v257_v54  ;;  %v265_v15 = vpack.c.bf16 %v68_v9, %v64_v8  ;;  %v65_v17 = vld [vmem:[%s534_s2 + $0x190] sm:$0xff]  ;;  %v79_v18 = vld [vmem:[%s535_s1] sm:$0xf]  ;;  %v297_v19 = vpack.c.bf16 %v70_v11, %v66_v10  ;;  %v72_v21 = vld [vmem:[%s534_s2 + $0x1c8] sm:$0xff]  ;;  %v267_v25 = vpack.c.bf16 %v67_v16, %v63_v13 }
  0x14   :  { %290 = vmatprep.subr.bf16.mxu1 %v289_v58  ;;  %v69_v20 = vld [vmem:[%s534_s2 + $0x1b0] sm:$0xff]  ;;  %v76_v22 = vld [vmem:[%s534_s2 + $0x1e8] sm:$0xff]  ;;  %82 = vperm.xlu0 %307, %v79_v18   ;;  %v74_v23 = vld [vmem:[%s534_s2 + $0x1d8] sm:$0xff] }
  0x15   :  { %v78_v24 = vld [vmem:[%s534_s2 + $0x1f8] sm:$0xff]  ;;  %v299_v26 = vpack.c.bf16 %v69_v20, %v65_v17  ;;  %v269_v27 = vpack.c.bf16 %v76_v22, %v72_v21  ;;  %v71_v28 = vld [vmem:[%s534_s2 + $0x1c0] sm:$0xff]  ;;  %v73_v31 = vld [vmem:[%s534_s2 + $0x1d0] sm:$0xff] }
  0x16   :  { %260 = vmatpush1.bf16.msra.mxu0 %v259_v0  ;;  %v75_v29 = vld [vmem:[%s534_s2 + $0x1e0] sm:$0xff]  ;;  %v301_v30 = vpack.c.bf16 %v78_v24, %v74_v23  ;;  %v77_v32 = vld [vmem:[%s534_s2 + $0x1f0] sm:$0xff] }
  0x17   :  { %292 = vmatpush1.bf16.msra.mxu1 %v291_v1  ;;  %262 = vmatprep.subr.bf16.mxu0 %v261_v2  ;;  %v271_v33 = vpack.c.bf16 %v75_v29, %v71_v28  ;;  %v303_v34 = vpack.c.bf16 %v77_v32, %v73_v31  ;;  %v14_v35 = vld [vmem:[%s536_s0] sm:$0xf] }
  0x18   :  { %294 = vmatprep.subr.bf16.mxu1 %v293_v6 }
  0x1a   :  { %264 = vmatpush1.bf16.msra.mxu0 %v263_v12 }
  0x1b   :  { %296 = vmatpush1.bf16.msra.mxu1 %v295_v14  ;;  %266 = vmatprep.subr.bf16.mxu0 %v265_v15 }
  0x1c   :  { %298 = vmatprep.subr.bf16.mxu1 %v297_v19 }
  0x1e   :  { %268 = vmatpush1.bf16.msra.mxu0 %v267_v25 }
  0x1f   :  { %300 = vmatpush1.bf16.msra.mxu1 %v299_v26  ;;  %270 = vmatprep.subr.bf16.mxu0 %v269_v27 }
  0x20   :  { %302 = vmatprep.subr.bf16.mxu1 %v301_v30 }
  0x22   :  { %272 = vmatpush1.bf16.msra.mxu0 %v271_v33 }
  0x23   :  { %304 = vmatpush1.bf16.msra.mxu1 %v303_v34 }
  0x25   :  { %150 = vmatmul.mubr.f32.vlgmr.msra.gmra.mrb[0].mxu0 %v14_v35 }
  0x26   :  { %221 = vmatmul.mubr.f32.vlgmr.msra.gmra.mrb[0].mxu1 %v14_v35 }
  0x93   :  { %v83_v36 = vpop.permute.xlu0 %82 }
  0xf8   :  { %v151_v37 = vpop.f32.mrb[0].mxu0 }
  0xf9   :  { %v152_v38 = vadd.f32 %v151_v37, %v83_v36  ;;  %v222_v39 = vpop.f32.mrb[0].mxu1  ;;  %v153_v40 = vpop.f32.mrb[1].mxu0 }
  0xfa   :  { %v223_v41 = vadd.f32 %v222_v39, %v83_v36  ;;  %v154_v42 = vadd.f32 %v153_v40, %v83_v36  ;;  %v224_v43 = vpop.f32.mrb[1].mxu1 }
  0xfb   :  { %v225_v44 = vadd.f32 %v224_v43, %v83_v36 }
  0xfc   :  { %v231_v45 = vcombine.low %v152_v38, %v154_v42 }
  0xfd   :  { %v232_v46 = vcombine.low %v223_v41, %v225_v44 }
  0xfe   :  { %235 = vst [vmem:[%s537_s3] sm:$0xff] %v231_v45 }
  0xff   :  { %236 = vst [vmem:[%s537_s3 + $0x8] sm:$0xff] %v232_v46 }

</bundles_post_ra>
